<compile_context>
chip_gen: v7x
topology: tpu7x:2x2x1
jax: 0.10.0
libtpu: 0.0.40
codegen_flags: <defaults>
</compile_context>

<pallas_src>
from functools import partial

import jax
import jax.numpy as jnp
from jax.experimental import pallas as pl
from jax.experimental.pallas import tpu as pltpu

_SQRT_2_OVER_PI = 0.7978845608028654  # sqrt(2/pi), shared by kernel & reference


def _round_up(x, m):
    return ((x + m - 1) // m) * m


def _gelu_tanh(x):
    # Exact GPT-2 / nn.GELU(approximate='tanh') formula, in f32.
    c = jnp.float32(_SQRT_2_OVER_PI)
    return 0.5 * x * (1.0 + jnp.tanh(c * (x + 0.044715 * x * x * x)))


def _pick_f_chunk(f, target=1024):
    """Largest multiple of 128 that divides F and is <= target (else F itself)."""
    if f <= target:
        return f
    best = None
    c = 128
    while c <= target:
        if f % c == 0:
            best = c
        c += 128
    return best if best is not None else f


def _vmem_capacity_bytes():
    try:
        return int(getattr(pltpu.get_tpu_info(), "vmem_capacity_bytes", 64 << 20))
    except Exception:  # hardware query unavailable (e.g. interpret / old jax)
        return 64 << 20


def mlp_kernel(x_ref, w1_ref, b1_ref, w2_ref, b2_ref, o_ref, acc_ref,
               *, f_chunk, n_chunks):
    """One row tile: y = gelu(x @ W1 + b1) @ W2 + b2, with F chunked in-kernel."""
    # bf16 MXU operands, f32 accumulation; the cast happens in-kernel so the
    # wrapper never makes an extra HBM pass over the activation.
    xb = x_ref[...].astype(jnp.bfloat16)
    acc_ref[...] = jnp.zeros_like(acc_ref)
    # TODO(synk): on v6e/v7x (bf16 VPU/EUP) the GELU chain could run in bf16;
    # kept f32 so a single kernel stays fast on v5e and numerically tight.
    for c in range(n_chunks):  # short static loop; static ref slices are free
        lo = c * f_chunk
        h = jnp.dot(xb, w1_ref[:, lo:lo + f_chunk],
                    preferred_element_type=jnp.float32)
        h = _gelu_tanh(h + b1_ref[:, lo:lo + f_chunk])
        acc_ref[...] += jnp.dot(h.astype(jnp.bfloat16),
                                w2_ref[lo:lo + f_chunk, :],
                                preferred_element_type=jnp.float32)
    o_ref[...] = (acc_ref[...] + b2_ref[...]).astype(o_ref.dtype)


def mlp_pallas(x, w_fc, b_fc, w_proj, b_proj, *, row_tile=None, f_chunk=None):
    """x: [B, T, E]; w_fc: [E, F]; b_fc: [*, F]; w_proj: [F, E]; b_proj: [*, E]."""
    B, T, E = x.shape
    F = w_fc.shape[1]
    M = B * T
    out_dtype = x.dtype

    vmem_cap = _vmem_capacity_bytes()
    vmem_limit = max(32 << 20, int(vmem_cap * 0.85))  # ~15% headroom, per-gen

    # Row tile: 512 on 128-MiB-VMEM chips (v5e/v6e), 256 on v7x (64 MiB / TC);
    # multiple of 16 sublanes (bf16 packing), clamped for small M.
    if row_tile is None:
        row_tile = 512 if vmem_cap >= (100 << 20) else 256
    rt = max(16, min(row_tile, _round_up(M, 16)))
    rt = _round_up(rt, 16)

    x2 = x.reshape(M, E)
    m_rows = M
    if M < rt:  # tiny-M edge case only; large M is never padded in the wrapper
        x2 = jnp.pad(x2, ((0, rt - M), (0, 0)))
        m_rows = rt
    grid_m = pl.cdiv(m_rows, rt)  # ragged final row block is masked by Pallas

    # bf16 MXU weights (no-op if the caller already passes / caches bf16
    # weights); biases stay f32 and are added after f32 accumulation.
    w1 = w_fc if w_fc.dtype == jnp.bfloat16 else w_fc.astype(jnp.bfloat16)
    w2 = w_proj if w_proj.dtype == jnp.bfloat16 else w_proj.astype(jnp.bfloat16)
    b1 = b_fc.astype(jnp.float32).reshape(1, F)
    b2 = b_proj.astype(jnp.float32).reshape(1, E)

    # In-kernel F chunking keeps the live gelu intermediate at [rt, fc] f32
    # instead of [rt, F].
    fc_sz = f_chunk if (f_chunk and F % f_chunk == 0) else _pick_f_chunk(F)
    n_chunks = F // fc_sz

    # Resident weights (constant index map): single-buffer them when they are
    # big enough for the extra pipeline buffer to matter; capability-gated via
    # hasattr, no try/except fallback.
    weight_bytes = 2 * (E * F + F * E)  # bf16
    single_buffer = hasattr(pl, "Buffered") and weight_bytes > (8 << 20)
    # TODO(synk): for E >= 1280 on v7x (64 MiB VMEM per TensorCore), stream the
    # weights over an F-chunked "arbitrary" grid axis (Buffered(2-3) specs +
    # per-row-tile f32 accumulator) instead of keeping them fully resident.

    def const_spec(shape):
        if single_buffer:
            return pl.BlockSpec(shape, lambda i: (0, 0),
                                pipeline_mode=pl.Buffered(1))
        return pl.BlockSpec(shape, lambda i: (0, 0))

    kernel = partial(mlp_kernel, f_chunk=fc_sz, n_chunks=n_chunks)

    out = pl.pallas_call(
        kernel,
        out_shape=jax.ShapeDtypeStruct((m_rows, E), out_dtype),
        grid_spec=pltpu.PrefetchScalarGridSpec(
            num_scalar_prefetch=0,
            grid=(grid_m,),
            in_specs=[
                pl.BlockSpec((rt, E), lambda i: (i, 0)),  # x rows (pipelined)
                const_spec((E, F)),                       # W_fc   (resident)
                const_spec((1, F)),                       # b_fc
                const_spec((F, E)),                       # W_proj (resident)
                const_spec((1, E)),                       # b_proj
            ],
            out_specs=pl.BlockSpec((rt, E), lambda i: (i, 0)),
            scratch_shapes=[pltpu.VMEM((rt, E), jnp.float32)],  # y accumulator
        ),
        compiler_params=pltpu.CompilerParams(
            dimension_semantics=("parallel",),
            vmem_limit_bytes=vmem_limit,
        ),
    )(x2, w1, b1, w2, b2)

    return out[:M].reshape(B, T, E)


if __name__ == "__main__":
    # Small config consistent with the module: n_embd=32 -> fc_dim=128.
    # (Real GPT-2 sizes E=768/F=3072 are what the tiling policy targets.)
    B, T, E = 2, 8, 32
    F = 4 * E

    key = jax.random.PRNGKey(0)
    kx, kw1, kb1, kw2, kb2 = jax.random.split(key, 5)

    x = jax.random.normal(kx, (B, T, E), dtype=jnp.float32)
    # nn.Linear-style deterministic init (uniform, scaled by fan-in).
    w_fc = jax.random.uniform(kw1, (E, F), jnp.float32, -1.0, 1.0) / jnp.sqrt(E)
    b_fc = jax.random.uniform(kb1, (1, F), jnp.float32, -1.0, 1.0) / jnp.sqrt(E)
    w_proj = jax.random.uniform(kw2, (F, E), jnp.float32, -1.0, 1.0) / jnp.sqrt(F)
    b_proj = jax.random.uniform(kb2, (1, E), jnp.float32, -1.0, 1.0) / jnp.sqrt(F)

    # One-time bf16 weight conversion (cache these in real use — per review).
    w_fc_bf16 = w_fc.astype(jnp.bfloat16)
    w_proj_bf16 = w_proj.astype(jnp.bfloat16)

    y = mlp_pallas(x, w_fc_bf16, b_fc, w_proj_bf16, b_proj)
    jax.block_until_ready(y)

    # Reference: same math as the PyTorch module, using the same bf16 MXU
    # operands / f32 accumulation the kernel feeds the MXU.
    xb = x.reshape(-1, E).astype(jnp.bfloat16).astype(jnp.float32)
    w1b = w_fc.astype(jnp.bfloat16).astype(jnp.float32)
    w2b = w_proj.astype(jnp.bfloat16).astype(jnp.float32)
    h = xb @ w1b + b_fc
    h = 0.5 * h * (1.0 + jnp.tanh(_SQRT_2_OVER_PI * (h + 0.044715 * h ** 3)))
    y_ref = (h.astype(jnp.bfloat16).astype(jnp.float32) @ w2b + b_proj)
    y_ref = y_ref.reshape(B, T, E)

    max_err = float(jnp.max(jnp.abs(y - y_ref)))
    assert jnp.allclose(y, y_ref, atol=2e-3, rtol=2e-3), max_err

    print("KERNEL_OK")
</pallas_src>

<mosaic_0001>
module attributes {stable_mosaic.version = 11 : i64} {
  func.func @mlp_kernel(%arg0: i32, %arg1: memref<16x32xf32, #tpu.memory_space<vmem>>, %arg2: memref<32x128xbf16, #tpu.memory_space<vmem>>, %arg3: memref<1x128xf32, #tpu.memory_space<vmem>>, %arg4: memref<128x32xbf16, #tpu.memory_space<vmem>>, %arg5: memref<1x32xf32, #tpu.memory_space<vmem>>, %arg6: memref<16x32xf32, #tpu.memory_space<vmem>>, %arg7: memref<16x32xf32, #tpu.memory_space<vmem>>) attributes {dimension_semantics = [#tpu.dimension_semantics<parallel>], iteration_bounds = array<i64: 1>, scalar_prefetch = 0 : i64, scratch_operands = 1 : i64, tpu.core_type = #tpu.core_type<tc>, window_params = [{transform_indices = @transform_0, window_bounds = array<i64: 16, 32>}, {pipeline_mode = #tpu.pipeline_mode<synchronous>, transform_indices = @transform_1, window_bounds = array<i64: 32, 128>}, {pipeline_mode = #tpu.pipeline_mode<synchronous>, transform_indices = @transform_2, window_bounds = array<i64: 1, 128>}, {pipeline_mode = #tpu.pipeline_mode<synchronous>, transform_indices = @transform_3, window_bounds = array<i64: 128, 32>}, {pipeline_mode = #tpu.pipeline_mode<synchronous>, transform_indices = @transform_4, window_bounds = array<i64: 1, 32>}, {transform_indices = @transform_5, window_bounds = array<i64: 16, 32>}]} {
    %c0 = arith.constant 0 : index
    %c0_0 = arith.constant 0 : index
    %0 = vector.load %arg1[%c0, %c0_0] : memref<16x32xf32, #tpu.memory_space<vmem>>, vector<16x32xf32>
    %1 = arith.truncf %0 : vector<16x32xf32> to vector<16x32xbf16>
    %cst = arith.constant 0.000000e+00 : f32
    %2 = vector.broadcast %cst : f32 to vector<16x32xf32>
    %c0_1 = arith.constant 0 : index
    %c0_2 = arith.constant 0 : index
    %3 = vector.load %arg7[%c0_1, %c0_2] : memref<16x32xf32, #tpu.memory_space<vmem>>, vector<16x32xf32>
    tpu.vector_store %arg7[%c0_1, %c0_2], %2 {strides = array<i32>} : memref<16x32xf32, #tpu.memory_space<vmem>>, vector<16x32xf32>,
    %c0_3 = arith.constant 0 : index
    %c0_4 = arith.constant 0 : index
    %4 = vector.load %arg2[%c0_3, %c0_4] : memref<32x128xbf16, #tpu.memory_space<vmem>>, vector<32x128xbf16>
    %cst_5 = arith.constant dense<0.000000e+00> : vector<16x128xf32>
    %5 = tpu.matmul %1, %4, %cst_5 {dimension_numbers = #tpu.dot_dimension_numbers<[1], [0], [0], [1], [0, 0, 1, 1], [], []>} : vector<16x32xbf16>, vector<32x128xbf16>, vector<16x128xf32> -> vector<16x128xf32>
    %c0_6 = arith.constant 0 : index
    %c0_7 = arith.constant 0 : index
    %6 = vector.load %arg3[%c0_6, %c0_7] : memref<1x128xf32, #tpu.memory_space<vmem>>, vector<1x128xf32>
    %7 = vector.broadcast %6 : vector<1x128xf32> to vector<16x128xf32>
    %8 = arith.addf %5, %7 : vector<16x128xf32>
    %cst_8 = arith.constant 5.000000e-01 : f32
    %9 = vector.broadcast %cst_8 : f32 to vector<16x128xf32>
    %10 = arith.mulf %9, %8 : vector<16x128xf32>
    %cst_9 = arith.constant 4.471500e-02 : f32
    %11 = vector.broadcast %cst_9 : f32 to vector<16x128xf32>
    %12 = arith.mulf %11, %8 : vector<16x128xf32>
    %13 = arith.mulf %12, %8 : vector<16x128xf32>
    %14 = arith.mulf %13, %8 : vector<16x128xf32>
    %15 = arith.addf %8, %14 : vector<16x128xf32>
    %cst_10 = arith.constant 0.797884583 : f32
    %16 = vector.broadcast %cst_10 : f32 to vector<16x128xf32>
    %17 = arith.mulf %16, %15 : vector<16x128xf32>
    %18 = math.tanh %17 : vector<16x128xf32>
    %cst_11 = arith.constant 1.000000e+00 : f32
    %19 = vector.broadcast %cst_11 : f32 to vector<16x128xf32>
    %20 = arith.addf %19, %18 : vector<16x128xf32>
    %21 = arith.mulf %10, %20 : vector<16x128xf32>
    %c0_12 = arith.constant 0 : index
    %c0_13 = arith.constant 0 : index
    %22 = vector.load %arg7[%c0_12, %c0_13] : memref<16x32xf32, #tpu.memory_space<vmem>>, vector<16x32xf32>
    %23 = arith.truncf %21 : vector<16x128xf32> to vector<16x128xbf16>
    %c0_14 = arith.constant 0 : index
    %c0_15 = arith.constant 0 : index
    %24 = vector.load %arg4[%c0_14, %c0_15] : memref<128x32xbf16, #tpu.memory_space<vmem>>, vector<128x32xbf16>
    %cst_16 = arith.constant dense<0.000000e+00> : vector<16x32xf32>
    %25 = tpu.matmul %23, %24, %cst_16 {dimension_numbers = #tpu.dot_dimension_numbers<[1], [0], [0], [1], [0, 0, 1, 1], [], []>} : vector<16x128xbf16>, vector<128x32xbf16>, vector<16x32xf32> -> vector<16x32xf32>
    %26 = arith.addf %22, %25 : vector<16x32xf32>
    %c0_17 = arith.constant 0 : index
    %c0_18 = arith.constant 0 : index
    %27 = vector.load %arg7[%c0_17, %c0_18] : memref<16x32xf32, #tpu.memory_space<vmem>>, vector<16x32xf32>
    tpu.vector_store %arg7[%c0_17, %c0_18], %26 {strides = array<i32>} : memref<16x32xf32, #tpu.memory_space<vmem>>, vector<16x32xf32>,
    %c0_19 = arith.constant 0 : index
    %c0_20 = arith.constant 0 : index
    %28 = vector.load %arg7[%c0_19, %c0_20] : memref<16x32xf32, #tpu.memory_space<vmem>>, vector<16x32xf32>
    %c0_21 = arith.constant 0 : index
    %c0_22 = arith.constant 0 : index
    %29 = vector.load %arg5[%c0_21, %c0_22] : memref<1x32xf32, #tpu.memory_space<vmem>>, vector<1x32xf32>
    %30 = vector.broadcast %29 : vector<1x32xf32> to vector<16x32xf32>
    %31 = arith.addf %28, %30 : vector<16x32xf32>
    %c0_23 = arith.constant 0 : index
    %c0_24 = arith.constant 0 : index
    %32 = vector.load %arg6[%c0_23, %c0_24] : memref<16x32xf32, #tpu.memory_space<vmem>>, vector<16x32xf32>
    tpu.vector_store %arg6[%c0_23, %c0_24], %31 {strides = array<i32>} : memref<16x32xf32, #tpu.memory_space<vmem>>, vector<16x32xf32>,
    return
  }
  func.func @transform_0(%arg0: i32) -> (i32, i32) {
    %c0_i32 = arith.constant 0 : i32
    %c0_i32_0 = arith.constant 0 : i32
    return %arg0, %c0_i32 : i32, i32
  }
  func.func @transform_1(%arg0: i32) -> (i32, i32) {
    %c0_i32 = arith.constant 0 : i32
    %c0_i32_0 = arith.constant 0 : i32
    %c0_i32_1 = arith.constant 0 : i32
    return %c0_i32, %c0_i32_0 : i32, i32
  }
  func.func @transform_2(%arg0: i32) -> (i32, i32) {
    %c0_i32 = arith.constant 0 : i32
    %c0_i32_0 = arith.constant 0 : i32
    %c0_i32_1 = arith.constant 0 : i32
    return %c0_i32, %c0_i32_0 : i32, i32
  }
  func.func @transform_3(%arg0: i32) -> (i32, i32) {
    %c0_i32 = arith.constant 0 : i32
    %c0_i32_0 = arith.constant 0 : i32
    %c0_i32_1 = arith.constant 0 : i32
    return %c0_i32, %c0_i32_0 : i32, i32
  }
  func.func @transform_4(%arg0: i32) -> (i32, i32) {
    %c0_i32 = arith.constant 0 : i32
    %c0_i32_0 = arith.constant 0 : i32
    %c0_i32_1 = arith.constant 0 : i32
    return %c0_i32, %c0_i32_0 : i32, i32
  }
  func.func @transform_5(%arg0: i32) -> (i32, i32) {
    %c0_i32 = arith.constant 0 : i32
    %c0_i32_0 = arith.constant 0 : i32
    return %arg0, %c0_i32 : i32, i32
  }
}

</mosaic_0001>

<bundles_post_ra>
// kernel: tpu_custom_call.1
= control target key start
LH: loop header
LB: loop body
LE: loop exit
PB: predicated region body
PF: predicated region fallthrough
CT: control target
= control target key end

     0   :  { %v350_v1 = vmov 0.0   ;;  %vm351_vm0 = vmmov 0   ;;  %vm25_vm1 = vcmask 261120   ;;  %s446_s0 = inlined_call_operand.vmem [shape: f32[16,32], index: 0, kind: input, shape index: {}]   ;;  %s447_s1 = inlined_call_operand.vmem [shape: bf16[32,128], index: 1, kind: input, shape index: {}]   ;;  %s448_s2 = inlined_call_operand.vmem [shape: f32[1,128], index: 2, kind: input, shape index: {}]   ;;  %s449_s3 = inlined_call_operand.vmem [shape: bf16[128,32], index: 3, kind: input, shape index: {}]   ;;  %s450_s4 = inlined_call_operand.vmem [shape: f32[1,32], index: 4, kind: input, shape index: {}]   ;;  %s451_s5 = inlined_call_operand.hbm [shape: f32[16,32], index: 5, kind: output, shape index: {}]  }
   0x1   :  { %v312_v0 = vld [vmem:[%s447_s1] sm:$0xff]   ;;  %279 = vmatprep.subr.bf16.mxu0 %v350_v1  ;;  %287 = vmatprep.subr.bf16.mxu1 %v350_v1  ;;  %v313_v2 = vld [vmem:[%s447_s1 + $0x8] sm:$0xff]   ;;  %26 = vst.msk [vmem:[#allocation2] sm:$0xff] %vm25_vm1, %v350_v1  ;;  %27 = vst.msk [vmem:[#allocation2 + $0x8] sm:$0xff] %vm25_vm1, %v350_v1 }
   0x2   :  { %280 = vmatpush3.bf16.msra.mxu0 %v312_v0  ;;  %283 = vmatprep.mubr.msk.bf16.mxu0 %vm351_vm0, %v350_v1  ;;  %v22_v3 = vld [vmem:[%s446_s0] sm:$0xff]  ;;  %v23_v4 = vld [vmem:[%s446_s0 + $0x8] sm:$0xff] }
   0x3   :  { %281 = vmatprep.subr.bf16.mxu0 %v350_v1  ;;  %303 = vmatprep.mubr.msk.bf16.mxu1 %vm351_vm0, %v350_v1  ;;  %v24_v5 = vpack.c.bf16 %v23_v4, %v22_v3 }
   0x6   :  { %282 = vmatpush3.bf16.msra.mxu0 %v313_v2 }
   0x7   :  { %10 = vsyncpa [#allocation4], 0  ;;  %v314_v6 = vld [vmem:[%s449_s3] sm:$0xff]   ;;  %v315_v7 = vld [vmem:[%s449_s3 + $0x8] sm:$0xff]   ;;  %s352_s17 = smov [#allocation3]  }
   0x8   :  { %288 = vmatpush3.bf16.msra.mxu1 %v314_v6  ;;  %v316_v8 = vld [vmem:[%s449_s3 + $0x10] sm:$0xff]   ;;  %v317_v9 = vld [vmem:[%s449_s3 + $0x18] sm:$0xff]   ;;  %v318_v10 = vld [vmem:[%s449_s3 + $0x20] sm:$0xff]   ;;  %s243_s18 = sshll.u32 %s352_s17, 4  ;;  %s244_s18 = int_to_ptr.vmem [resolvable:$true] %s243_s18 }
   0x9   :  { %284 = vmatmul.mubr.msk.bf16.vlgmr.msra.gmra.mrb[0].mxu0 %vm25_vm1, %v24_v5  ;;  %289 = vmatprep.subr.bf16.mxu1 %v350_v1  ;;  %v319_v11 = vld [vmem:[%s449_s3 + $0x28] sm:$0xff]   ;;  %v320_v12 = vld [vmem:[%s449_s3 + $0x30] sm:$0xff]   ;;  %v321_v13 = vld [vmem:[%s449_s3 + $0x38] sm:$0xff]   ;;  %s326_s19 = scalar_lea.vmem %s244_s18, 256  ;;  %p331_p1 = scmp.lt.s32.totalorder %s244_s18, %s244_s18 }
   0xa   :  { %v254_v14 = vld [vmem:[%s448_s2] ss:$0 sm:$0xff]  ;;  %v114_v42 = vld [vmem:[#allocation2 + $0x8] sm:$0xff]  ;;  %p327_p0 = scmp.ne.s32.totalorder %s244_s18, %s326_s19  ;;  %p332_p2 = scmp.lt.s32.totalorder %s326_s19, %s326_s19 }
   0xb   :  { %v113_v40 = vld [vmem:[#allocation2] sm:$0xff] }
   0xc   :  { %290 = vmatpush3.bf16.msra.mxu1 %v315_v7  ;;  %v266_v48 = vld [vmem:[%s450_s4] ss:$0 sm:$0xff]  ;;  %p333_p3 = por %p332_p2, %p331_p1 }
   0xd   :  { %291 = vmatprep.subr.bf16.mxu1 %v350_v1 }
   0xe   :  { %p334_p4 = pnand %p333_p3, %p327_p0 }
  0x10   :  { %292 = vmatpush3.bf16.msra.mxu1 %v316_v8 }
  0x11   :  { %293 = vmatprep.subr.bf16.mxu1 %v350_v1 }
  0x14   :  { %294 = vmatpush3.bf16.msra.mxu1 %v317_v9 }
  0x15   :  { %295 = vmatprep.subr.bf16.mxu1 %v350_v1 }
  0x18   :  { %296 = vmatpush3.bf16.msra.mxu1 %v318_v10 }
  0x19   :  { %297 = vmatprep.subr.bf16.mxu1 %v350_v1 }
  0x1c   :  { %298 = vmatpush3.bf16.msra.mxu1 %v319_v11 }
  0x1d   :  { %299 = vmatprep.subr.bf16.mxu1 %v350_v1 }
  0x20   :  { %300 = vmatpush3.bf16.msra.mxu1 %v320_v12 }
  0x21   :  { %301 = vmatprep.subr.bf16.mxu1 %v350_v1 }
  0x24   :  { %302 = vmatpush3.bf16.msra.mxu1 %v321_v13 }
  0xdc   :  { %v88_v15 = vpop.f32.mrb[0].mxu0 }
  0xdd   :  { %v89_v16 = vadd.f32 %v254_v14, %v88_v15  ;;  %v285_v17 = vpop.f32.mrb[1].mxu0 }
  0xde   :  { %v91_v18 = vpop.f32.mrb[2].mxu0 }
  0xdf   :  { %v97_v19 = vmul.f32 0.044715, %v89_v16  ;;  %v92_v20 = vadd.f32 %v254_v14, %v91_v18  ;;  %v286_v21 = vpop.f32.mrb[3].mxu0  ;;  %v95_v34 = vmul.f32 0.5, %v89_v16 }
  0xe1   :  { %v99_v22 = vmul.f32 %v97_v19, %v89_v16  ;;  %v98_v23 = vmul.f32 0.044715, %v92_v20  ;;  %v96_v35 = vmul.f32 0.5, %v92_v20 }
  0xe3   :  { %v101_v24 = vmul.f32 %v99_v22, %v89_v16  ;;  %v100_v25 = vmul.f32 %v98_v23, %v92_v20 }
  0xe5   :  { %v102_v26 = vmul.f32 %v100_v25, %v92_v20  ;;  %v103_v27 = vadd.f32 %v101_v24, %v89_v16 }
  0xe7   :  { %v104_v28 = vadd.f32 %v102_v26, %v92_v20  ;;  %v105_v29 = vmul.f32 0.7978846, %v103_v27 }
  0xe9   :  { %v106_v30 = vmul.f32 0.7978846, %v104_v28  ;;  %322 = vtanh.f32 %v105_v29 }
  0xeb   :  { %324 = vtanh.f32 %v106_v30 }
  0xf3   :  { %v323_v31 = vpop.eup %322 }
  0xf4   :  { %v109_v32 = vadd.f32 1.0, %v323_v31 }
  0xf5   :  { %v325_v33 = vpop.eup %324 }
  0xf6   :  { %v110_v36 = vadd.f32 1.0, %v325_v33  ;;  %v111_v37 = vmul.f32 %v109_v32, %v95_v34 }
  0xf8   :  { %v112_v38 = vmul.f32 %v110_v36, %v96_v35 }
  0xfa   :  { %v115_v39 = vpack.c.bf16 %v112_v38, %v111_v37 }
  0xfc   :  { %304 = vmatmul.mubr.bf16.vlgmr.msra.gmra.mrb[0].mxu1 %v115_v39 }
 0x1cf   :  { %v214_v41 = vpop.f32.mrb[0].mxu1 }
 0x1d0   :  { %v221_v43 = vadd.f32 %v214_v41, %v113_v40  ;;  %v305_v44 = vpop.f32.mrb[1].mxu1 }
 0x1d1   :  { %v217_v45 = vpop.f32.mrb[2].mxu1 }
 0x1d2   :  { %223 = vst.msk [vmem:[#allocation2] sm:$0xff] %vm25_vm1, %v221_v43  ;;  %v222_v46 = vadd.f32 %v217_v45, %v114_v42  ;;  %v306_v47 = vpop.f32.mrb[3].mxu1 }
 0x1d4   :  { %224 = vst.msk [vmem:[#allocation2 + $0x8] sm:$0xff] %vm25_vm1, %v222_v46 }
 0x1d9   :  { %v225_v49 = vld [vmem:[#allocation2] sm:$0xff] }
 0x1da   :  { %v234_v50 = vadd.f32 %v266_v48, %v225_v49 }
 0x1db   :  { %v226_v51 = vld [vmem:[#allocation2 + $0x8] sm:$0xff] }
 0x1dc   :  { %v235_v52 = vadd.f32 %v266_v48, %v226_v51  ;;  %236 = vst.msk [vmem:[#allocation3] sm:$0xff] %vm25_vm1, %v234_v50 }
 0x1de   :  { %237 = vst.msk [vmem:[#allocation3 + $0x8] sm:$0xff] %vm25_vm1, %v235_v52 }
 0x1df   :  { %337 = shalt.err (!%p334_p4)
}
 0x1e0   :  { %s338_s21 = scalar_lea.hbm %s451_s5, 256 }
 0x1e1   :  { %p339_p5 = scmp.ne.s32.totalorder %s451_s5, %s338_s21  ;;  %p342_p6 = scmp.lt.u32.totalorder %s338_s21, %s451_s5 }
 0x1e3   :  { %p344_p7 = pnand %p342_p6, %p339_p5 }
 0x1e5   :  { %347 = shalt.err (!%p344_p7)
}
 0x1e6   :  { %s353_s1 = smov 128   ;;  %s354_s26 = smov 8  }
 0x1e7   :  { %249 = dma.vmem_to_hbm [thread:$0]  %s244_s18, 256, %s451_s5, [#allocation4], %s353_s1, %s353_s1, %s354_s26  }
 0x1e8   :  { %348 = dma.done.wait [#allocation4], 256  }
 0x1e9   :  { %349 = vsyncadd [#allocation4], 4294967040 }
 0x1ea   :  { %253 = vsyncpa [#allocation4], 1 }

</bundles_post_ra>
